<compile_context>
chip_gen: v7x
topology: tpu7x:2x2x1
jax: 0.10.0
libtpu: 0.0.40
codegen_flags: <defaults>
</compile_context>

<pallas_src>
import jax
import jax.numpy as jnp
from jax.experimental import pallas as pl
from jax.experimental.pallas import tpu as pltpu

INPUT_DIM = 100
HIDDEN1 = 256
HIDDEN2 = 128
OUTPUT_DIM = 14          # num_unique_tags

LANE = 128
SUBLANE = 8
INPUT_PAD = 128          # INPUT_DIM padded to lane width
OUTPUT_PAD = 128         # OUTPUT_DIM padded to lane width


def _round_up(n, m):
    return ((n + m - 1) // m) * m


def ffnn_kernel(x_ref, w1_ref, b1_ref, w2_ref, b2_ref, w3_ref, b3_ref, o_ref):
    # fc1 + relu   (bf16 inputs, f32 accumulation on the MXU; bias in f32)
    h1 = jnp.dot(x_ref[...], w1_ref[...],
                 preferred_element_type=jnp.float32) + b1_ref[...]
    h1 = jnp.maximum(h1, 0.0)
    # fc2 + relu
    h2 = jnp.dot(h1.astype(jnp.bfloat16), w2_ref[...],
                 preferred_element_type=jnp.float32) + b2_ref[...]
    h2 = jnp.maximum(h2, 0.0)
    # fc3 (no activation). Padded output columns stay exactly zero because the
    # corresponding w3/b3 columns are zero-padded.
    o_ref[...] = (jnp.dot(h2.astype(jnp.bfloat16), w3_ref[...],
                          preferred_element_type=jnp.float32)
                  + b3_ref[...]).astype(o_ref.dtype)


def pos_ffnn_forward(x, w1, b1, w2, b2, w3, b3, *, batch_tile=512):
    """Forward pass. x: (B, 100) f32. Weights as (in, out), biases (1, out). Returns (B, 14) f32."""
    B, in_dim = x.shape
    assert in_dim == INPUT_DIM

    # Effective batch tile: a multiple of 8 sublanes, no larger than the (padded) batch.
    bt = min(batch_tile, _round_up(B, SUBLANE))
    bt = _round_up(bt, SUBLANE)
    B_pad = _round_up(B, bt)
    grid = (B_pad // bt,)

    # ---- Pad & cast operands (lane-dense K and N; bf16 matmul inputs, f32 biases). ----
    x_p = jnp.zeros((B_pad, INPUT_PAD), jnp.bfloat16).at[:B, :INPUT_DIM].set(
        x.astype(jnp.bfloat16))
    w1_p = jnp.zeros((INPUT_PAD, HIDDEN1), jnp.bfloat16).at[:INPUT_DIM, :].set(
        w1.astype(jnp.bfloat16))
    w2_p = w2.astype(jnp.bfloat16)
    w3_p = jnp.zeros((HIDDEN2, OUTPUT_PAD), jnp.bfloat16).at[:, :OUTPUT_DIM].set(
        w3.astype(jnp.bfloat16))
    b1_p = b1.astype(jnp.float32)
    b2_p = b2.astype(jnp.float32)
    b3_p = jnp.zeros((1, OUTPUT_PAD), jnp.float32).at[:, :OUTPUT_DIM].set(
        b3.astype(jnp.float32))

    # Weights/biases use constant index maps -> they stay resident in VMEM across the
    # batch grid; only x / out tiles stream.
    in_specs = [
        pl.BlockSpec((bt, INPUT_PAD),        lambda i: (i, 0)),   # x
        pl.BlockSpec((INPUT_PAD, HIDDEN1),   lambda i: (0, 0)),   # w1
        pl.BlockSpec((1, HIDDEN1),           lambda i: (0, 0)),   # b1
        pl.BlockSpec((HIDDEN1, HIDDEN2),     lambda i: (0, 0)),   # w2
        pl.BlockSpec((1, HIDDEN2),           lambda i: (0, 0)),   # b2
        pl.BlockSpec((HIDDEN2, OUTPUT_PAD),  lambda i: (0, 0)),   # w3
        pl.BlockSpec((1, OUTPUT_PAD),        lambda i: (0, 0)),   # b3
    ]
    out_spec = pl.BlockSpec((bt, OUTPUT_PAD), lambda i: (i, 0))

    out_padded = pl.pallas_call(
        ffnn_kernel,
        out_shape=jax.ShapeDtypeStruct((B_pad, OUTPUT_PAD), jnp.float32),
        grid_spec=pltpu.PrefetchScalarGridSpec(
            num_scalar_prefetch=0,
            grid=grid,
            in_specs=in_specs,
            out_specs=out_spec,
        ),
        compiler_params=pltpu.CompilerParams(
            dimension_semantics=("parallel",),       # shard batch tiles across TCs
            vmem_limit_bytes=64 * 1024 * 1024,       # safe on v5e/v6e/v7x for bt<=2048
        ),
    )(x_p, w1_p, b1_p, w2_p, b2_p, w3_p, b3_p)

    # Strip batch padding and the 14->128 output padding.
    return out_padded[:B, :OUTPUT_DIM]


def init_params(key):
    """Deterministic init mirroring nn.Linear's U(-1/sqrt(in), 1/sqrt(in))."""
    ks = jax.random.split(key, 6)

    def linear_init(kw, kb, fan_in, fan_out):
        bound = 1.0 / jnp.sqrt(fan_in)
        w = jax.random.uniform(kw, (fan_in, fan_out), jnp.float32, -bound, bound)
        b = jax.random.uniform(kb, (1, fan_out), jnp.float32, -bound, bound)
        return w, b

    w1, b1 = linear_init(ks[0], ks[1], INPUT_DIM, HIDDEN1)
    w2, b2 = linear_init(ks[2], ks[3], HIDDEN1, HIDDEN2)
    w3, b3 = linear_init(ks[4], ks[5], HIDDEN2, OUTPUT_DIM)
    return w1, b1, w2, b2, w3, b3


if __name__ == "__main__":
    key = jax.random.PRNGKey(0)
    k_params, k_x = jax.random.split(key)

    w1, b1, w2, b2, w3, b3 = init_params(k_params)

    # Small example batch. NOTE: at B=8 this is launch/overhead-bound; the kernel is
    # tuned for large batches (bt=512 default) where tiles stream and megacore shards.
    batch = 8
    x = jax.random.normal(k_x, (batch, INPUT_DIM), jnp.float32)

    out = pos_ffnn_forward(x, w1, b1, w2, b2, w3, b3)
    out = jax.block_until_ready(out)

    # Reference check in plain f32 JAX (same math as the PyTorch forward).
    h1 = jnp.maximum(x @ w1 + b1, 0.0)
    h2 = jnp.maximum(h1 @ w2 + b2, 0.0)
    ref = h2 @ w3 + b3

    assert out.shape == (batch, OUTPUT_DIM)
    # Looser tolerance only because matmul inputs are bf16 (f32 accumulation).
    assert jnp.allclose(out, ref, atol=5e-2, rtol=5e-2), float(jnp.abs(out - ref).max())

    print("KERNEL_OK")
</pallas_src>

<mosaic_0001>
module attributes {stable_mosaic.version = 11 : i64} {
  func.func @ffnn_kernel(%arg0: i32, %arg1: memref<8x128xbf16, #tpu.memory_space<vmem>>, %arg2: memref<128x256xbf16, #tpu.memory_space<vmem>>, %arg3: memref<1x256xf32, #tpu.memory_space<vmem>>, %arg4: memref<256x128xbf16, #tpu.memory_space<vmem>>, %arg5: memref<1x128xf32, #tpu.memory_space<vmem>>, %arg6: memref<128x128xbf16, #tpu.memory_space<vmem>>, %arg7: memref<1x128xf32, #tpu.memory_space<vmem>>, %arg8: memref<8x128xf32, #tpu.memory_space<vmem>>) attributes {dimension_semantics = [#tpu.dimension_semantics<parallel>], iteration_bounds = array<i64: 1>, scalar_prefetch = 0 : i64, scratch_operands = 0 : i64, tpu.core_type = #tpu.core_type<tc>, window_params = [{transform_indices = @transform_0, window_bounds = array<i64: 8, 128>}, {pipeline_mode = #tpu.pipeline_mode<synchronous>, transform_indices = @transform_1, window_bounds = array<i64: 128, 256>}, {pipeline_mode = #tpu.pipeline_mode<synchronous>, transform_indices = @transform_2, window_bounds = array<i64: 1, 256>}, {pipeline_mode = #tpu.pipeline_mode<synchronous>, transform_indices = @transform_3, window_bounds = array<i64: 256, 128>}, {pipeline_mode = #tpu.pipeline_mode<synchronous>, transform_indices = @transform_4, window_bounds = array<i64: 1, 128>}, {pipeline_mode = #tpu.pipeline_mode<synchronous>, transform_indices = @transform_5, window_bounds = array<i64: 128, 128>}, {pipeline_mode = #tpu.pipeline_mode<synchronous>, transform_indices = @transform_6, window_bounds = array<i64: 1, 128>}, {transform_indices = @transform_7, window_bounds = array<i64: 8, 128>}]} {
    %c0 = arith.constant 0 : index
    %c0_0 = arith.constant 0 : index
    %0 = vector.load %arg1[%c0, %c0_0] : memref<8x128xbf16, #tpu.memory_space<vmem>>, vector<8x128xbf16>
    %c0_1 = arith.constant 0 : index
    %c0_2 = arith.constant 0 : index
    %1 = vector.load %arg2[%c0_1, %c0_2] : memref<128x256xbf16, #tpu.memory_space<vmem>>, vector<128x256xbf16>
    %cst = arith.constant dense<0.000000e+00> : vector<8x256xf32>
    %2 = tpu.matmul %0, %1, %cst {dimension_numbers = #tpu.dot_dimension_numbers<[1], [0], [0], [1], [0, 0, 1, 1], [], []>} : vector<8x128xbf16>, vector<128x256xbf16>, vector<8x256xf32> -> vector<8x256xf32>
    %c0_3 = arith.constant 0 : index
    %c0_4 = arith.constant 0 : index
    %3 = vector.load %arg3[%c0_3, %c0_4] : memref<1x256xf32, #tpu.memory_space<vmem>>, vector<1x256xf32>
    %4 = vector.broadcast %3 : vector<1x256xf32> to vector<8x256xf32>
    %5 = arith.addf %2, %4 : vector<8x256xf32>
    %cst_5 = arith.constant 0.000000e+00 : f32
    %6 = vector.broadcast %cst_5 : f32 to vector<8x256xf32>
    %7 = arith.maximumf %5, %6 : vector<8x256xf32>
    %8 = arith.truncf %7 : vector<8x256xf32> to vector<8x256xbf16>
    %c0_6 = arith.constant 0 : index
    %c0_7 = arith.constant 0 : index
    %9 = vector.load %arg4[%c0_6, %c0_7] : memref<256x128xbf16, #tpu.memory_space<vmem>>, vector<256x128xbf16>
    %cst_8 = arith.constant dense<0.000000e+00> : vector<8x128xf32>
    %10 = tpu.matmul %8, %9, %cst_8 {dimension_numbers = #tpu.dot_dimension_numbers<[1], [0], [0], [1], [0, 0, 1, 1], [], []>} : vector<8x256xbf16>, vector<256x128xbf16>, vector<8x128xf32> -> vector<8x128xf32>
    %c0_9 = arith.constant 0 : index
    %c0_10 = arith.constant 0 : index
    %11 = vector.load %arg5[%c0_9, %c0_10] : memref<1x128xf32, #tpu.memory_space<vmem>>, vector<1x128xf32>
    %12 = vector.broadcast %11 : vector<1x128xf32> to vector<8x128xf32>
    %13 = arith.addf %10, %12 : vector<8x128xf32>
    %cst_11 = arith.constant 0.000000e+00 : f32
    %14 = vector.broadcast %cst_11 : f32 to vector<8x128xf32>
    %15 = arith.maximumf %13, %14 : vector<8x128xf32>
    %16 = arith.truncf %15 : vector<8x128xf32> to vector<8x128xbf16>
    %c0_12 = arith.constant 0 : index
    %c0_13 = arith.constant 0 : index
    %17 = vector.load %arg6[%c0_12, %c0_13] : memref<128x128xbf16, #tpu.memory_space<vmem>>, vector<128x128xbf16>
    %cst_14 = arith.constant dense<0.000000e+00> : vector<8x128xf32>
    %18 = tpu.matmul %16, %17, %cst_14 {dimension_numbers = #tpu.dot_dimension_numbers<[1], [0], [0], [1], [0, 0, 1, 1], [], []>} : vector<8x128xbf16>, vector<128x128xbf16>, vector<8x128xf32> -> vector<8x128xf32>
    %c0_15 = arith.constant 0 : index
    %c0_16 = arith.constant 0 : index
    %19 = vector.load %arg7[%c0_15, %c0_16] : memref<1x128xf32, #tpu.memory_space<vmem>>, vector<1x128xf32>
    %20 = vector.broadcast %19 : vector<1x128xf32> to vector<8x128xf32>
    %21 = arith.addf %18, %20 : vector<8x128xf32>
    %c0_17 = arith.constant 0 : index
    %c0_18 = arith.constant 0 : index
    %22 = vector.load %arg8[%c0_17, %c0_18] : memref<8x128xf32, #tpu.memory_space<vmem>>, vector<8x128xf32>
    tpu.vector_store %arg8[%c0_17, %c0_18], %21 {strides = array<i32>} : memref<8x128xf32, #tpu.memory_space<vmem>>, vector<8x128xf32>,
    return
  }
  func.func @transform_0(%arg0: i32) -> (i32, i32) {
    %c0_i32 = arith.constant 0 : i32
    %c0_i32_0 = arith.constant 0 : i32
    return %arg0, %c0_i32 : i32, i32
  }
  func.func @transform_1(%arg0: i32) -> (i32, i32) {
    %c0_i32 = arith.constant 0 : i32
    %c0_i32_0 = arith.constant 0 : i32
    %c0_i32_1 = arith.constant 0 : i32
    return %c0_i32, %c0_i32_0 : i32, i32
  }
  func.func @transform_2(%arg0: i32) -> (i32, i32) {
    %c0_i32 = arith.constant 0 : i32
    %c0_i32_0 = arith.constant 0 : i32
    %c0_i32_1 = arith.constant 0 : i32
    return %c0_i32, %c0_i32_0 : i32, i32
  }
  func.func @transform_3(%arg0: i32) -> (i32, i32) {
    %c0_i32 = arith.constant 0 : i32
    %c0_i32_0 = arith.constant 0 : i32
    %c0_i32_1 = arith.constant 0 : i32
    return %c0_i32, %c0_i32_0 : i32, i32
  }
  func.func @transform_4(%arg0: i32) -> (i32, i32) {
    %c0_i32 = arith.constant 0 : i32
    %c0_i32_0 = arith.constant 0 : i32
    %c0_i32_1 = arith.constant 0 : i32
    return %c0_i32, %c0_i32_0 : i32, i32
  }
  func.func @transform_5(%arg0: i32) -> (i32, i32) {
    %c0_i32 = arith.constant 0 : i32
    %c0_i32_0 = arith.constant 0 : i32
    %c0_i32_1 = arith.constant 0 : i32
    return %c0_i32, %c0_i32_0 : i32, i32
  }
  func.func @transform_6(%arg0: i32) -> (i32, i32) {
    %c0_i32 = arith.constant 0 : i32
    %c0_i32_0 = arith.constant 0 : i32
    %c0_i32_1 = arith.constant 0 : i32
    return %c0_i32, %c0_i32_0 : i32, i32
  }
  func.func @transform_7(%arg0: i32) -> (i32, i32) {
    %c0_i32 = arith.constant 0 : i32
    %c0_i32_0 = arith.constant 0 : i32
    return %arg0, %c0_i32 : i32, i32
  }
}

</mosaic_0001>

<bundles_post_ra>
// kernel: tpu_custom_call.1
= control target key start
LH: loop header
LB: loop body
LE: loop exit
PB: predicated region body
PF: predicated region fallthrough
CT: control target
= control target key end

     0   :  { %12 = vsyncpa [#allocation3], 0  ;;  %s1069_s0 = inlined_call_operand.hbm [shape: bf16[8,128], index: 0, kind: input, shape index: {}]   ;;  %s1070_s1 = inlined_call_operand.hbm [shape: bf16[128,256], index: 1, kind: input, shape index: {}]   ;;  %s1071_s2 = inlined_call_operand.hbm [shape: f32[1,256], index: 2, kind: input, shape index: {}]   ;;  %s1072_s3 = inlined_call_operand.hbm [shape: bf16[256,128], index: 3, kind: input, shape index: {}]   ;;  %s1073_s4 = inlined_call_operand.hbm [shape: f32[1,128], index: 4, kind: input, shape index: {}]   ;;  %s1074_s5 = inlined_call_operand.hbm [shape: bf16[128,128], index: 5, kind: input, shape index: {}]   ;;  %s1075_s6 = inlined_call_operand.hbm [shape: f32[1,128], index: 6, kind: input, shape index: {}]   ;;  %s1076_s7 = inlined_call_operand.hbm [shape: f32[8,128], index: 7, kind: output, shape index: {}]  }
   0x1   :  { %13 = vsyncpa [#allocation6], 0 }
   0x2   :  { %14 = vsyncpa [#allocation9], 0 }
   0x3   :  { %15 = vsyncpa [#allocation12], 0 }
   0x4   :  { %16 = vsyncpa [#allocation4], 0  ;;  %s918_s24 = smov [#allocation5]   ;;  %s732_s28 = scalar_lea.hbm %s1070_s1, 2048 }
   0x5   :  { %s32_s25 = sshll.u32 %s918_s24, 4  ;;  %p733_p0 = scmp.ne.s32.totalorder %s1070_s1, %s732_s28  ;;  %s33_s25 = int_to_ptr.vmem [resolvable:$true] %s32_s25 }
   0x6   :  { %p736_p1 = scmp.lt.u32.totalorder %s732_s28, %s1070_s1 }
   0x8   :  { %p738_p2 = pnand %p736_p1, %p733_p0 }
   0xa   :  { %741 = shalt.err (!%p738_p2)
}
   0xb   :  { %s742_s10 = scalar_lea.vmem %s33_s25, 2048  ;;  %p747_p4 = scmp.lt.s32.totalorder %s33_s25, %s33_s25 }
   0xc   :  { %p743_p3 = scmp.ne.s32.totalorder %s33_s25, %s742_s10  ;;  %p748_p5 = scmp.lt.s32.totalorder %s742_s10, %s742_s10 }
   0xe   :  { %p749_p6 = por %p748_p5, %p747_p4 }
  0x10   :  { %p750_p7 = pnand %p749_p6, %p743_p3 }
  0x12   :  { %753 = shalt.err (!%p750_p7)
}
  0x13   :  { %s919_s11 = smov 128   ;;  %s920_s12 = smov 8  }
  0x14   :  { %38 = dma.hbm_to_vmem [thread:$0]  %s1070_s1, 2048, %s33_s25, [#allocation6], %s919_s11, %s919_s11, %s920_s12  }
  0x15   :  { %s921_s15 = smov [#allocation8]   ;;  %s754_s19 = scalar_lea.hbm %s1072_s3, 2048 }
  0x16   :  { %s54_s16 = sshll.u32 %s921_s15, 4  ;;  %p755_p8 = scmp.ne.s32.totalorder %s1072_s3, %s754_s19  ;;  %s55_s16 = int_to_ptr.vmem [resolvable:$true] %s54_s16 }
  0x17   :  { %p758_p9 = scmp.lt.u32.totalorder %s754_s19, %s1072_s3 }
  0x19   :  { %p760_p10 = pnand %p758_p9, %p755_p8 }
  0x1b   :  { %763 = shalt.err (!%p760_p10)
}
  0x1c   :  { %s764_s24 = scalar_lea.vmem %s55_s16, 2048  ;;  %p769_p12 = scmp.lt.s32.totalorder %s55_s16, %s55_s16 }
  0x1d   :  { %p765_p11 = scmp.ne.s32.totalorder %s55_s16, %s764_s24  ;;  %p770_p13 = scmp.lt.s32.totalorder %s764_s24, %s764_s24 }
  0x1f   :  { %p771_p0 = por %p770_p13, %p769_p12 }
  0x21   :  { %p772_p1 = pnand %p771_p0, %p765_p11 }
  0x23   :  { %775 = shalt.err (!%p772_p1)
}
  0x24   :  { %s922_s1 = smov 64   ;;  %s923_s25 = smov 4  }
  0x25   :  { %60 = dma.hbm_to_vmem [thread:$0]  %s1072_s3, 2048, %s55_s16, [#allocation9], %s922_s1, %s922_s1, %s923_s25  }
  0x26   :  { %s924_s28 = smov [#allocation11]   ;;  %s925_s30 = smov [#allocation2]  }
  0x27   :  { %s76_s29 = sshll.u32 %s924_s28, 4  ;;  %s23_s8 = sshll.u32 %s925_s30, 4  ;;  %s77_s29 = int_to_ptr.vmem [resolvable:$true] %s76_s29  ;;  %s24_s8 = int_to_ptr.vmem [resolvable:$true] %s23_s8 }
  0x28   :  { %s776_s11 = scalar_lea.hbm %s1074_s5, 1024 }
  0x29   :  { %p777_p2 = scmp.ne.s32.totalorder %s1074_s5, %s776_s11  ;;  %p780_p3 = scmp.lt.u32.totalorder %s776_s11, %s1074_s5 }
  0x2b   :  { %p782_p4 = pnand %p780_p3, %p777_p2 }
  0x2d   :  { %785 = shalt.err (!%p782_p4)
}
  0x2e   :  { %s786_s3 = scalar_lea.vmem %s77_s29, 1024  ;;  %p791_p6 = scmp.lt.s32.totalorder %s77_s29, %s77_s29 }
  0x2f   :  { %p787_p5 = scmp.ne.s32.totalorder %s77_s29, %s786_s3  ;;  %p792_p7 = scmp.lt.s32.totalorder %s786_s3, %s786_s3 }
  0x31   :  { %p793_p8 = por %p792_p7, %p791_p6 }
  0x33   :  { %p794_p9 = pnand %p793_p8, %p787_p5 }
  0x35   :  { %797 = shalt.err (!%p794_p9)
}
  0x36   :  { %82 = dma.hbm_to_vmem [thread:$0]  %s1074_s5, 1024, %s77_s29, [#allocation12], %s922_s1, %s922_s1, %s923_s25  }
  0x37   :  { %s798_s20 = scalar_lea.hbm %s1069_s0, 64 }
  0x38   :  { %p799_p10 = scmp.ne.s32.totalorder %s1069_s0, %s798_s20  ;;  %p802_p11 = scmp.lt.u32.totalorder %s798_s20, %s1069_s0 }
  0x3a   :  { %p804_p12 = pnand %p802_p11, %p799_p10 }
  0x3c   :  { %807 = shalt.err (!%p804_p12)
}
  0x3d   :  { %s808_s26 = scalar_lea.vmem %s24_s8, 64  ;;  %p813_p0 = scmp.lt.s32.totalorder %s24_s8, %s24_s8 }
  0x3e   :  { %p809_p13 = scmp.ne.s32.totalorder %s24_s8, %s808_s26  ;;  %p814_p1 = scmp.lt.s32.totalorder %s808_s26, %s808_s26 }
  0x40   :  { %p815_p2 = por %p814_p1, %p813_p0 }
  0x42   :  { %p816_p3 = pnand %p815_p2, %p809_p13 }
  0x44   :  { %819 = shalt.err (!%p816_p3)
}
  0x45   :  { %26 = dma.hbm_to_vmem [thread:$0]  %s1069_s0, 64, %s24_s8, [#allocation3]  }
  0x46   :  { %s926_s25 = smov [#allocation7]   ;;  %s927_s28 = smov [#allocation10]  }
  0x47   :  { %s45_s27 = sshll.u32 %s926_s25, 4  ;;  %s67_s29 = sshll.u32 %s927_s28, 4  ;;  %s46_s27 = int_to_ptr.vmem [resolvable:$true] %s45_s27  ;;  %s68_s29 = int_to_ptr.vmem [resolvable:$true] %s67_s29 }
  0x48   :  { %s820_s10 = scalar_lea.hbm %s1071_s2, 32 }
  0x49   :  { %p821_p4 = scmp.ne.s32.totalorder %s1071_s2, %s820_s10  ;;  %p824_p5 = scmp.lt.u32.totalorder %s820_s10, %s1071_s2 }
  0x4b   :  { %p826_p6 = pnand %p824_p5, %p821_p4 }
  0x4d   :  { %829 = shalt.err (!%p826_p6)
}
  0x4e   :  { %s830_s0 = scalar_lea.vmem %s46_s27, 32  ;;  %p835_p8 = scmp.lt.s32.totalorder %s46_s27, %s46_s27 }
  0x4f   :  { %p831_p7 = scmp.ne.s32.totalorder %s46_s27, %s830_s0  ;;  %p836_p9 = scmp.lt.s32.totalorder %s830_s0, %s830_s0 }
  0x51   :  { %p837_p10 = por %p836_p9, %p835_p8 }
  0x53   :  { %p838_p11 = pnand %p837_p10, %p831_p7 }
  0x55   :  { %841 = shalt.err (!%p838_p11)
}
  0x56   :  { %48 = dma.hbm_to_vmem [thread:$0]  %s1071_s2, 32, %s46_s27, [#allocation6]  }
  0x57   :  { %s842_s17 = scalar_lea.hbm %s1073_s4, 16 }
  0x58   :  { %p843_p12 = scmp.ne.s32.totalorder %s1073_s4, %s842_s17  ;;  %p846_p13 = scmp.lt.u32.totalorder %s842_s17, %s1073_s4 }
  0x5a   :  { %p848_p0 = pnand %p846_p13, %p843_p12 }
  0x5c   :  { %851 = shalt.err (!%p848_p0)
}
  0x5d   :  { %s852_s22 = scalar_lea.vmem %s68_s29, 16  ;;  %s856_s23 = scalar_lea.vmem %s68_s29, 32 }
  0x5e   :  { %p853_p1 = scmp.ne.s32.totalorder %s68_s29, %s852_s22  ;;  %p857_p2 = scmp.lt.s32.totalorder %s68_s29, %s68_s29 }
  0x5f   :  { %p858_p3 = scmp.lt.s32.totalorder %s856_s23, %s852_s22 }
  0x61   :  { %p859_p4 = por %p858_p3, %p857_p2 }
  0x63   :  { %p860_p5 = pnand %p859_p4, %p853_p1 }
  0x65   :  { %863 = shalt.err (!%p860_p5)
}
  0x66   :  { %70 = dma.hbm_to_vmem [thread:$0]  %s1073_s4, 16, %s68_s29, [#allocation9]  }
  0x67   :  { %s928_s26 = smov [#allocation13]   ;;  %s864_s27 = scalar_lea.hbm %s1075_s6, 16 }
  0x68   :  { %s89_s5 = sshll.u32 %s928_s26, 4  ;;  %p865_p6 = scmp.ne.s32.totalorder %s1075_s6, %s864_s27  ;;  %s90_s5 = int_to_ptr.vmem [resolvable:$true] %s89_s5 }
  0x69   :  { %p868_p7 = scmp.lt.u32.totalorder %s864_s27, %s1075_s6 }
  0x6b   :  { %p870_p8 = pnand %p868_p7, %p865_p6 }
  0x6d   :  { %873 = shalt.err (!%p870_p8)
}
  0x6e   :  { %s874_s11 = scalar_lea.vmem %s90_s5, 16  ;;  %s878_s4 = scalar_lea.vmem %s90_s5, 32 }
  0x6f   :  { %p875_p9 = scmp.ne.s32.totalorder %s90_s5, %s874_s11  ;;  %p879_p10 = scmp.lt.s32.totalorder %s90_s5, %s90_s5 }
  0x70   :  { %p880_p11 = scmp.lt.s32.totalorder %s878_s4, %s874_s11 }
  0x72   :  { %p881_p12 = por %p880_p11, %p879_p10 }
  0x74   :  { %p882_p13 = pnand %p881_p12, %p875_p9 }
  0x76   :  { %885 = shalt.err (!%p882_p13)
}
  0x77   :  { %92 = dma.hbm_to_vmem [thread:$0]  %s1075_s6, 16, %s90_s5, [#allocation12]  }
  0x78   :  { %908 = dma.done.wait [#allocation3], 64  }
  0x79   :  { %909 = vsyncadd [#allocation3], 4294967232 }
  0x7a   :  { %910 = dma.done.wait [#allocation6], 2080  }
  0x7b   :  { %911 = vsyncadd [#allocation6], 4294965216 }
  0x7c   :  { %912 = dma.done.wait [#allocation9], 2064  }
  0x7d   :  { %913 = vsyncadd [#allocation9], 4294965232 }
  0x7e   :  { %914 = dma.done.wait [#allocation12], 1040  }
  0x7f   :  { %915 = vsyncadd [#allocation12], 4294966256  ;;  %v929_v0 = vmov 0   ;;  %v684_v1 = vld [vmem:[#allocation5 + $0x4] ss:$8 sps:$4 sm:$0xff]   ;;  %v712_v15 = vld [vmem:[#allocation8 + $0x50] sm:$0xff]   ;;  %v134_v41 = vlaneseq }
  0x80   :  { %256 = vmatprep.mubr.bf16.mxu0 %v929_v0  ;;  %v686_v2 = vld [vmem:[#allocation5] ss:$8 sps:$4 sm:$0xff]   ;;  %224 = vmatprep.subr.bf16.mxu0 %v684_v1  ;;  %v687_v3 = vld [vmem:[#allocation5 + $0x14] ss:$8 sps:$4 sm:$0xff]   ;;  %v689_v4 = vld [vmem:[#allocation5 + $0x10] ss:$8 sps:$4 sm:$0xff]  }
  0x81   :  { %225 = vmatpush1.bf16.msra.mxu0 %v686_v2  ;;  %v690_v5 = vld [vmem:[#allocation5 + $0x24] ss:$8 sps:$4 sm:$0xff]   ;;  %v692_v6 = vld [vmem:[#allocation5 + $0x20] ss:$8 sps:$4 sm:$0xff]   ;;  %v693_v7 = vld [vmem:[#allocation5 + $0x34] ss:$8 sps:$4 sm:$0xff]  }
  0x82   :  { %226 = vmatprep.subr.bf16.mxu0 %v687_v3  ;;  %v695_v8 = vld [vmem:[#allocation5 + $0x30] ss:$8 sps:$4 sm:$0xff]   ;;  %v696_v9 = vld [vmem:[#allocation5 + $0x44] ss:$8 sps:$4 sm:$0xff]   ;;  %v698_v12 = vld [vmem:[#allocation5 + $0x40] ss:$8 sps:$4 sm:$0xff]  }
  0x83   :  { %v708_v10 = vld [vmem:[#allocation8 + $0x40] sm:$0xff]   ;;  %v710_v13 = vld [vmem:[#allocation8 + $0x48] sm:$0xff]   ;;  %v699_v16 = vld [vmem:[#allocation5 + $0x54] ss:$8 sps:$4 sm:$0xff]   ;;  %v930_v35 = vmov 0.0   ;;  %v135_v42 = vshrl.u32 %v134_v41, 7 }
  0x84   :  { %v709_v11 = vld [vmem:[#allocation8] sm:$0xff]   ;;  %618 = vmatprep.subr.bf16.mxu1 %v708_v10  ;;  %v711_v14 = vld [vmem:[#allocation8 + $0x8] sm:$0xff]   ;;  %v713_v18 = vld [vmem:[#allocation8 + $0x10] sm:$0xff]   ;;  %vm931_vm0 = vmmov 0   ;;  %s932_s6 = smov [#allocation14]  }
  0x85   :  { %227 = vmatpush1.bf16.msra.mxu0 %v689_v4  ;;  %619 = vmatpush3.bf16.msra.mxu1 %v709_v11  ;;  %v701_v17 = vld [vmem:[#allocation5 + $0x50] ss:$8 sps:$4 sm:$0xff]   ;;  %v702_v20 = vld [vmem:[#allocation5 + $0x64] ss:$8 sps:$4 sm:$0xff]   ;;  %v704_v21 = vld [vmem:[#allocation5 + $0x60] ss:$8 sps:$4 sm:$0xff]  }
  0x86   :  { %228 = vmatprep.subr.bf16.mxu0 %v690_v5  ;;  %620 = vmatprep.subr.bf16.mxu1 %v710_v13  ;;  %v714_v19 = vld [vmem:[#allocation8 + $0x58] sm:$0xff]   ;;  %v716_v24 = vld [vmem:[#allocation8 + $0x60] sm:$0xff]   ;;  %v718_v27 = vld [vmem:[#allocation8 + $0x68] sm:$0xff]   ;;  %v136_v43 = vsub.s32 0, %v135_v42  ;;  %v140_v45 = vsub.s32 1, %v135_v42  ;;  %s564_s13 = sshll.u32 %s932_s6, 4  ;;  %s565_s13 = int_to_ptr.vmem [resolvable:$true] %s564_s13 }
  0x87   :  { %v705_v22 = vld [vmem:[#allocation5 + $0x74] ss:$8 sps:$4 sm:$0xff]   ;;  %v717_v25 = vld [vmem:[#allocation8 + $0x20] sm:$0xff]   ;;  %v707_v26 = vld [vmem:[#allocation5 + $0x70] ss:$8 sps:$4 sm:$0xff]   ;;  %s886_s14 = scalar_lea.vmem %s565_s13, 128  ;;  %p891_p1 = scmp.lt.s32.totalorder %s565_s13, %s565_s13 }
  0x88   :  { %v715_v23 = vld [vmem:[#allocation8 + $0x18] sm:$0xff]   ;;  %v719_v28 = vld [vmem:[#allocation8 + $0x28] sm:$0xff]   ;;  %v720_v30 = vld [vmem:[#allocation8 + $0x70] sm:$0xff]   ;;  %p887_p0 = scmp.ne.s32.totalorder %s565_s13, %s886_s14  ;;  %p892_p2 = scmp.lt.s32.totalorder %s886_s14, %s886_s14 }
  0x89   :  { %229 = vmatpush1.bf16.msra.mxu0 %v692_v6  ;;  %621 = vmatpush3.bf16.msra.mxu1 %v711_v14  ;;  %v115_v29 = vld [vmem:[#allocation2] sm:$0xf]  ;;  %v721_v31 = vld [vmem:[#allocation8 + $0x30] sm:$0xff]   ;;  %v724_v34 = vld [vmem:[#allocation11] sm:$0xff]  }
  0x8a   :  { %230 = vmatprep.subr.bf16.mxu0 %v693_v7  ;;  %622 = vmatprep.subr.bf16.mxu1 %v712_v15  ;;  %v722_v32 = vld [vmem:[#allocation8 + $0x78] sm:$0xff]   ;;  %v725_v36 = vld [vmem:[#allocation11 + $0x8] sm:$0xff]   ;;  %v728_v39 = vld [vmem:[#allocation11 + $0x20] sm:$0xff]   ;;  %p893_p3 = por %p892_p2, %p891_p1 }
  0x8b   :  { %v723_v33 = vld [vmem:[#allocation8 + $0x38] sm:$0xff]   ;;  %v729_v40 = vld [vmem:[#allocation11 + $0x28] sm:$0xff]   ;;  %v592_v61 = vld [vmem:[#allocation10] ss:$0 sm:$0xff] }
  0x8c   :  { %v726_v37 = vld [vmem:[#allocation11 + $0x10] sm:$0xff]   ;;  %v727_v38 = vld [vmem:[#allocation11 + $0x18] sm:$0xff]   ;;  %v609_v5 = vld [vmem:[#allocation13] ss:$0 sm:$0xff]  ;;  %p894_p4 = pnand %p893_p3, %p887_p0 }
  0x8d   :  { %231 = vmatpush1.bf16.msra.mxu0 %v695_v8  ;;  %623 = vmatpush3.bf16.msra.mxu1 %v713_v18  ;;  %v132_v44 = vld [vmem:[#allocation7] sm:$0x3]  ;;  %v730_v58 = vld [vmem:[#allocation11 + $0x30] sm:$0xff]  }
  0x8e   :  { %232 = vmatprep.subr.bf16.mxu0 %v696_v9  ;;  %624 = vmatprep.subr.bf16.mxu1 %v714_v19  ;;  %v137_v46 = vrot.slane %v132_v44, %v136_v43  ;;  %v141_v47 = vrot.slane %v132_v44, %v140_v45  ;;  %v731_v59 = vld [vmem:[#allocation11 + $0x38] sm:$0xff]  }
  0x91   :  { %233 = vmatpush1.bf16.msra.mxu0 %v698_v12  ;;  %625 = vmatpush3.bf16.msra.mxu1 %v715_v23 }
  0x92   :  { %234 = vmatprep.subr.bf16.mxu0 %v699_v16  ;;  %626 = vmatprep.subr.bf16.mxu1 %v716_v24 }
  0x95   :  { %235 = vmatpush1.bf16.msra.mxu0 %v701_v17  ;;  %627 = vmatpush3.bf16.msra.mxu1 %v717_v25 }
  0x96   :  { %236 = vmatprep.subr.bf16.mxu0 %v702_v20  ;;  %628 = vmatprep.subr.bf16.mxu1 %v718_v27 }
  0x99   :  { %237 = vmatpush1.bf16.msra.mxu0 %v704_v21  ;;  %629 = vmatpush3.bf16.msra.mxu1 %v719_v28 }
  0x9a   :  { %238 = vmatprep.subr.bf16.mxu0 %v705_v22  ;;  %630 = vmatprep.subr.bf16.mxu1 %v720_v30 }
  0x9d   :  { %239 = vmatpush1.bf16.msra.mxu0 %v707_v26  ;;  %631 = vmatpush3.bf16.msra.mxu1 %v721_v31 }
  0x9e   :  { %632 = vmatprep.subr.bf16.mxu1 %v722_v32  ;;  %649 = vmatprep.subr.bf16.mxu0 %v930_v35 }
  0xa0   :  { %257 = vmatmul.mubr.bf16.vlgmr.msra.gmra.mrb[0].mxu0 %v115_v29 }
  0xa1   :  { %633 = vmatpush3.bf16.msra.mxu1 %v723_v33  ;;  %650 = vmatpush3.bf16.msra.mxu0 %v724_v34 }
  0xa2   :  { %651 = vmatprep.subr.bf16.mxu0 %v930_v35  ;;  %665 = vmatprep.mubr.msk.bf16.mxu0 %vm931_vm0, %v930_v35 }
  0xa5   :  { %652 = vmatpush3.bf16.msra.mxu0 %v725_v36 }
  0xa6   :  { %653 = vmatprep.subr.bf16.mxu0 %v930_v35 }
  0xa9   :  { %654 = vmatpush3.bf16.msra.mxu0 %v726_v37 }
  0xaa   :  { %655 = vmatprep.subr.bf16.mxu0 %v930_v35 }
  0xad   :  { %656 = vmatpush3.bf16.msra.mxu0 %v727_v38 }
  0xae   :  { %657 = vmatprep.subr.bf16.mxu0 %v930_v35 }
  0xb1   :  { %658 = vmatpush3.bf16.msra.mxu0 %v728_v39 }
  0xb2   :  { %659 = vmatprep.subr.bf16.mxu0 %v930_v35 }
  0xb5   :  { %660 = vmatpush3.bf16.msra.mxu0 %v729_v40 }
  0xb6   :  { %661 = vmatprep.subr.bf16.mxu0 %v930_v35 }
  0xb9   :  { %662 = vmatpush3.bf16.msra.mxu0 %v730_v58 }
  0xba   :  { %663 = vmatprep.subr.bf16.mxu0 %v930_v35 }
  0xbd   :  { %664 = vmatpush3.bf16.msra.mxu0 %v731_v59 }
 0x173   :  { %v258_v48 = vpop.f32.mrb[0].mxu0 }
 0x174   :  { %v259_v49 = vadd.f32 %v258_v48, %v137_v46  ;;  %v260_v50 = vpop.f32.mrb[1].mxu0 }
 0x175   :  { %v261_v51 = vadd.f32 %v260_v50, %v141_v47  ;;  %v262_v52 = vpop.f32.mrb[2].mxu0 }
 0x176   :  { %v265_v53 = vmax.f32 %v259_v49, 0.0  ;;  %v263_v54 = vpop.f32.mrb[3].mxu0 }
 0x177   :  { %v266_v55 = vmax.f32 %v261_v51, 0.0 }
 0x178   :  { %v267_v57 = vpack.c.bf16 %v265_v53, %v265_v53 }
 0x179   :  { %v268_v56 = vpack.c.bf16 %v266_v55, %v266_v55 }
 0x17b   :  { %436 = vmatprep.mubr.bf16.mxu1 %v268_v56 }
 0x17c   :  { %437 = vmatmul.mubr.bf16.vlgmr.msra.gmra.mrb[0].mxu1 %v267_v57 }
 0x24f   :  { %v634_v60 = vpop.f32.mrb[0].mxu1 }
 0x250   :  { %v635_v62 = vpop.f32.mrb[1].mxu1 }
 0x251   :  { %v636_v63 = vadd.f32 %v635_v62, %v634_v60  ;;  %v637_v0 = vpop.f32.mrb[2].mxu1 }
 0x252   :  { %v638_v1 = vpop.f32.mrb[3].mxu1 }
 0x253   :  { %v439_v2 = vadd.f32 %v636_v63, %v592_v61 }
 0x255   :  { %v444_v3 = vmax.f32 %v439_v2, 0.0 }
 0x257   :  { %v445_v4 = vpack.c.bf16 %v444_v3, %v444_v3 }
 0x259   :  { %666 = vmatmul.mubr.bf16.vlgmr.msra.gmra.mrb[4].mxu0 %v445_v4 }
 0x32c   :  { %v551_v6 = vpop.f32.mrb[4].mxu0 }
 0x32d   :  { %v552_v7 = vadd.f32 %v609_v5, %v551_v6  ;;  %v667_v8 = vpop.f32.mrb[5].mxu0 }
 0x32e   :  { %v554_v9 = vpop.f32.mrb[6].mxu0 }
 0x32f   :  { %557 = vst [vmem:[#allocation14] sm:$0xff] %v552_v7  ;;  %v668_v10 = vpop.f32.mrb[7].mxu0 }
 0x330   :  { %897 = shalt.err (!%p894_p4)
}
 0x331   :  { %s898_s15 = scalar_lea.hbm %s1076_s7, 128 }
 0x332   :  { %p899_p5 = scmp.ne.s32.totalorder %s1076_s7, %s898_s15  ;;  %p902_p6 = scmp.lt.u32.totalorder %s898_s15, %s1076_s7 }
 0x334   :  { %p904_p7 = pnand %p902_p6, %p899_p5 }
 0x336   :  { %907 = shalt.err (!%p904_p7)
}
 0x337   :  { %567 = dma.vmem_to_hbm [thread:$0]  %s565_s13, 128, %s1076_s7, [#allocation4]  }
 0x338   :  { %916 = dma.done.wait [#allocation4], 128  }
 0x339   :  { %917 = vsyncadd [#allocation4], 4294967168 }
 0x33a   :  { %571 = vsyncpa [#allocation3], 1 }
 0x33b   :  { %572 = vsyncpa [#allocation6], 1 }
 0x33c   :  { %573 = vsyncpa [#allocation9], 1 }
 0x33d   :  { %574 = vsyncpa [#allocation12], 1 }
 0x33e   :  { %575 = vsyncpa [#allocation4], 1 }

</bundles_post_ra>
